<compile_context>
chip_gen: v7x
topology: tpu7x:2x2x1
jax: 0.10.0
libtpu: 0.0.40
codegen_flags: <defaults>
</compile_context>

<pallas_src>
import functools

import jax
import jax.numpy as jnp
from jax import lax
from jax.experimental import pallas as pl
from jax.experimental.pallas import tpu as pltpu

H1 = 500          # FC1 output features (PyTorch spec)
H1_PAD = 512      # lane-aligned padding of the 500-wide hidden layer
H2 = 128          # FC2 output features (already lane-aligned)

TB_TARGET = 1024  # target batch-tile rows (v5e-safe without a VMEM override)
SUB = 256         # in-kernel row sub-chunk (bounds f32 intermediate live range)


def _round_up(x, m):
    return ((x + m - 1) // m) * m


def actor_ma_kernel(obs_ref, w1_ref, b1_ref, w2_ref, b2_ref, w3_ref, b3_ref,
                    out_ref, *, sub, n_sub):
    """One batch tile: 3-layer MLP, processed in `n_sub` row sub-chunks."""

    def chunk(s):
        r = pl.multiple_of(s * sub, sub)
        x = obs_ref[pl.ds(r, sub), :].astype(jnp.bfloat16)

        # FC1 + ReLU  (bf16 MXU matmul, f32 accumulate)
        h1 = jnp.dot(x, w1_ref[...],
                     preferred_element_type=jnp.float32) + b1_ref[...]
        h1 = jnp.maximum(h1, 0.0)

        # FC2 + ReLU
        h2 = jnp.dot(h1.astype(jnp.bfloat16), w2_ref[...],
                     preferred_element_type=jnp.float32) + b2_ref[...]
        h2 = jnp.maximum(h2, 0.0)

        # FC3 + tanh  (128-lane bf16 store -> lane-dense, half the writeback)
        h3 = jnp.dot(h2.astype(jnp.bfloat16), w3_ref[...],
                     preferred_element_type=jnp.float32) + b3_ref[...]
        out_ref[pl.ds(r, sub), :] = jnp.tanh(h3).astype(out_ref.dtype)

    if n_sub == 1:
        chunk(0)
    else:
        def body(s, carry):
            chunk(s)
            return carry
        lax.fori_loop(0, n_sub, body, 0, unroll=True)


@functools.partial(jax.jit, static_argnames=("dim_action",))
def actor_ma_forward(obs, params, *, dim_action):
    """Run the whole actor forward pass in one Pallas call, tiled over batch."""
    w1, b1, w2, b2, w3, b3 = params
    B, dim_obs = obs.shape
    out_pad = w3.shape[1]

    # Batch-tile selection:
    #   large B : 1024-row tiles (amortize per-step overhead, v5e VMEM safe)
    #   mid B   : split into >= 2 tiles so v7x's 2nd TensorCore gets work
    #   small B : single tile, rounded to 16 rows (bf16 sublane pack)
    if B >= 2 * TB_TARGET:
        tb = TB_TARGET
    elif B > SUB:
        tb = _round_up(-(-B // 2), SUB)
    else:
        tb = max(_round_up(B, 16), 16)
    B_pad = _round_up(B, tb)

    obs_p = obs if B_pad == B else jnp.pad(obs, ((0, B_pad - B), (0, 0)))

    sub = min(SUB, tb)
    n_sub = tb // sub

    const = lambda i: (0, 0)   # weights: same block every step -> VMEM-resident

    out = pl.pallas_call(
        functools.partial(actor_ma_kernel, sub=sub, n_sub=n_sub),
        out_shape=jax.ShapeDtypeStruct((B_pad, out_pad), jnp.bfloat16),
        grid_spec=pltpu.PrefetchScalarGridSpec(
            num_scalar_prefetch=0,
            grid=(B_pad // tb,),
            in_specs=[
                pl.BlockSpec((tb, dim_obs), lambda i: (i, 0)),   # obs (batch tiled)
                pl.BlockSpec((dim_obs, H1_PAD), const),          # W1
                pl.BlockSpec((1, H1_PAD), const),                # b1
                pl.BlockSpec((H1_PAD, H2), const),               # W2
                pl.BlockSpec((1, H2), const),                    # b2
                pl.BlockSpec((H2, out_pad), const),              # W3
                pl.BlockSpec((1, out_pad), const),               # b3
            ],
            out_specs=pl.BlockSpec((tb, out_pad), lambda i: (i, 0)),
        ),
        compiler_params=pltpu.CompilerParams(
            dimension_semantics=("parallel",),
        ),
    )(obs_p, w1, b1, w2, b2, w3, b3)

    return out[:B, :dim_action].astype(jnp.float32)


def init_params(key, dim_observation, dim_action):
    """Deterministic init mimicking nn.Linear default U(-1/sqrt(fan_in), +...)."""
    dims = [(dim_observation, H1), (H1, H2), (H2, dim_action)]
    keys = jax.random.split(key, 2 * len(dims))
    ws, bs = [], []
    for i, (fan_in, fan_out) in enumerate(dims):
        bound = float(fan_in) ** -0.5
        w = jax.random.uniform(keys[2 * i], (fan_in, fan_out), jnp.float32,
                               minval=-bound, maxval=bound)
        b = jax.random.uniform(keys[2 * i + 1], (1, fan_out), jnp.float32,
                               minval=-bound, maxval=bound)
        ws.append(w)
        bs.append(b)
    return tuple(ws), tuple(bs)


def pack_params(ws, bs, dim_action):
    """Zero-pad to lane-aligned widths and cast weights to bf16 for the kernel."""
    w1, w2, w3 = ws
    b1, b2, b3 = bs
    out_pad = max(128, _round_up(dim_action, 128))
    # 500 -> 512: extra FC1 output columns and matching W2 input rows are zero,
    # so the padded network is exactly equivalent.
    w1p = jnp.pad(w1, ((0, 0), (0, H1_PAD - H1)))
    b1p = jnp.pad(b1, ((0, 0), (0, H1_PAD - H1)))
    w2p = jnp.pad(w2, ((0, H1_PAD - H1), (0, 0)))
    # dim_action -> 128 output lanes (padded lanes give tanh(0)=0, sliced off).
    w3p = jnp.pad(w3, ((0, 0), (0, out_pad - w3.shape[1])))
    b3p = jnp.pad(b3, ((0, 0), (0, out_pad - b3.shape[1])))
    return (w1p.astype(jnp.bfloat16), b1p,
            w2p.astype(jnp.bfloat16), b2,
            w3p.astype(jnp.bfloat16), b3p)


def reference_forward(obs, ws, bs):
    w1, w2, w3 = ws
    b1, b2, b3 = bs
    h1 = jax.nn.relu(obs @ w1 + b1)
    h2 = jax.nn.relu(h1 @ w2 + b2)
    return jnp.tanh(h2 @ w3 + b3)


if __name__ == "__main__":
    dim_observation, dim_action = 16, 4

    key = jax.random.PRNGKey(0)
    k_obs, k_obs2, k_params = jax.random.split(key, 3)
    ws, bs = init_params(k_params, dim_observation, dim_action)
    params = pack_params(ws, bs, dim_action)

    # Small batch: single-tile / single-sub-chunk path.
    obs_small = jax.random.normal(k_obs, (8, dim_observation), jnp.float32)
    out_small = jax.block_until_ready(
        actor_ma_forward(obs_small, params, dim_action=dim_action))
    ref_small = reference_forward(obs_small, ws, bs)
    assert out_small.shape == (8, dim_action), out_small.shape
    # bf16 weights/activations/output -> ~1e-2 relative deviation vs f32 ref.
    assert jnp.allclose(out_small, ref_small, atol=3e-2, rtol=3e-2)

    # Mid batch: exercises the 2-step grid and the in-kernel sub-chunk loop.
    obs_mid = jax.random.normal(k_obs2, (600, dim_observation), jnp.float32)
    out_mid = jax.block_until_ready(
        actor_ma_forward(obs_mid, params, dim_action=dim_action))
    ref_mid = reference_forward(obs_mid, ws, bs)
    assert out_mid.shape == (600, dim_action), out_mid.shape
    assert jnp.allclose(out_mid, ref_mid, atol=3e-2, rtol=3e-2)

    print("KERNEL_OK")
</pallas_src>

<mosaic_0001>
module attributes {stable_mosaic.version = 11 : i64} {
  func.func @actor_ma_kernel(%arg0: i32, %arg1: memref<16x16xf32, #tpu.memory_space<vmem>>, %arg2: memref<16x512xbf16, #tpu.memory_space<vmem>>, %arg3: memref<1x512xf32, #tpu.memory_space<vmem>>, %arg4: memref<512x128xbf16, #tpu.memory_space<vmem>>, %arg5: memref<1x128xf32, #tpu.memory_space<vmem>>, %arg6: memref<128x128xbf16, #tpu.memory_space<vmem>>, %arg7: memref<1x128xf32, #tpu.memory_space<vmem>>, %arg8: memref<16x128xbf16, #tpu.memory_space<vmem>>) attributes {dimension_semantics = [#tpu.dimension_semantics<parallel>], iteration_bounds = array<i64: 1>, scalar_prefetch = 0 : i64, scratch_operands = 0 : i64, tpu.core_type = #tpu.core_type<tc>, window_params = [{transform_indices = @transform_0, window_bounds = array<i64: 16, 16>}, {pipeline_mode = #tpu.pipeline_mode<synchronous>, transform_indices = @transform_1, window_bounds = array<i64: 16, 512>}, {pipeline_mode = #tpu.pipeline_mode<synchronous>, transform_indices = @transform_2, window_bounds = array<i64: 1, 512>}, {pipeline_mode = #tpu.pipeline_mode<synchronous>, transform_indices = @transform_3, window_bounds = array<i64: 512, 128>}, {pipeline_mode = #tpu.pipeline_mode<synchronous>, transform_indices = @transform_4, window_bounds = array<i64: 1, 128>}, {pipeline_mode = #tpu.pipeline_mode<synchronous>, transform_indices = @transform_5, window_bounds = array<i64: 128, 128>}, {pipeline_mode = #tpu.pipeline_mode<synchronous>, transform_indices = @transform_6, window_bounds = array<i64: 1, 128>}, {transform_indices = @transform_7, window_bounds = array<i64: 16, 128>}]} {
    %c0_i32 = arith.constant 0 : i32
    %0 = tpu.assume_multiple %c0_i32, 16 : i32
    %1 = arith.index_cast %0 : i32 to index
    %c0 = arith.constant 0 : index
    %2 = vector.load %arg1[%1, %c0] : memref<16x16xf32, #tpu.memory_space<vmem>>, vector<16x16xf32>
    %3 = arith.truncf %2 : vector<16x16xf32> to vector<16x16xbf16>
    %c0_0 = arith.constant 0 : index
    %c0_1 = arith.constant 0 : index
    %4 = vector.load %arg2[%c0_0, %c0_1] : memref<16x512xbf16, #tpu.memory_space<vmem>>, vector<16x512xbf16>
    %cst = arith.constant dense<0.000000e+00> : vector<16x512xf32>
    %5 = tpu.matmul %3, %4, %cst {dimension_numbers = #tpu.dot_dimension_numbers<[1], [0], [0], [1], [0, 0, 1, 1], [], []>} : vector<16x16xbf16>, vector<16x512xbf16>, vector<16x512xf32> -> vector<16x512xf32>
    %c0_2 = arith.constant 0 : index
    %c0_3 = arith.constant 0 : index
    %6 = vector.load %arg3[%c0_2, %c0_3] : memref<1x512xf32, #tpu.memory_space<vmem>>, vector<1x512xf32>
    %7 = vector.broadcast %6 : vector<1x512xf32> to vector<16x512xf32>
    %8 = arith.addf %5, %7 : vector<16x512xf32>
    %cst_4 = arith.constant 0.000000e+00 : f32
    %9 = vector.broadcast %cst_4 : f32 to vector<16x512xf32>
    %10 = arith.maximumf %8, %9 : vector<16x512xf32>
    %11 = arith.truncf %10 : vector<16x512xf32> to vector<16x512xbf16>
    %c0_5 = arith.constant 0 : index
    %c0_6 = arith.constant 0 : index
    %12 = vector.load %arg4[%c0_5, %c0_6] : memref<512x128xbf16, #tpu.memory_space<vmem>>, vector<512x128xbf16>
    %cst_7 = arith.constant dense<0.000000e+00> : vector<16x128xf32>
    %13 = tpu.matmul %11, %12, %cst_7 {dimension_numbers = #tpu.dot_dimension_numbers<[1], [0], [0], [1], [0, 0, 1, 1], [], []>} : vector<16x512xbf16>, vector<512x128xbf16>, vector<16x128xf32> -> vector<16x128xf32>
    %c0_8 = arith.constant 0 : index
    %c0_9 = arith.constant 0 : index
    %14 = vector.load %arg5[%c0_8, %c0_9] : memref<1x128xf32, #tpu.memory_space<vmem>>, vector<1x128xf32>
    %15 = vector.broadcast %14 : vector<1x128xf32> to vector<16x128xf32>
    %16 = arith.addf %13, %15 : vector<16x128xf32>
    %cst_10 = arith.constant 0.000000e+00 : f32
    %17 = vector.broadcast %cst_10 : f32 to vector<16x128xf32>
    %18 = arith.maximumf %16, %17 : vector<16x128xf32>
    %19 = arith.truncf %18 : vector<16x128xf32> to vector<16x128xbf16>
    %c0_11 = arith.constant 0 : index
    %c0_12 = arith.constant 0 : index
    %20 = vector.load %arg6[%c0_11, %c0_12] : memref<128x128xbf16, #tpu.memory_space<vmem>>, vector<128x128xbf16>
    %cst_13 = arith.constant dense<0.000000e+00> : vector<16x128xf32>
    %21 = tpu.matmul %19, %20, %cst_13 {dimension_numbers = #tpu.dot_dimension_numbers<[1], [0], [0], [1], [0, 0, 1, 1], [], []>} : vector<16x128xbf16>, vector<128x128xbf16>, vector<16x128xf32> -> vector<16x128xf32>
    %c0_14 = arith.constant 0 : index
    %c0_15 = arith.constant 0 : index
    %22 = vector.load %arg7[%c0_14, %c0_15] : memref<1x128xf32, #tpu.memory_space<vmem>>, vector<1x128xf32>
    %23 = vector.broadcast %22 : vector<1x128xf32> to vector<16x128xf32>
    %24 = arith.addf %21, %23 : vector<16x128xf32>
    %25 = math.tanh %24 : vector<16x128xf32>
    %26 = arith.truncf %25 : vector<16x128xf32> to vector<16x128xbf16>
    %27 = arith.index_cast %0 : i32 to index
    %c0_16 = arith.constant 0 : index
    %28 = vector.load %arg8[%27, %c0_16] : memref<16x128xbf16, #tpu.memory_space<vmem>>, vector<16x128xbf16>
    tpu.vector_store %arg8[%27, %c0_16], %26 {strides = array<i32>} : memref<16x128xbf16, #tpu.memory_space<vmem>>, vector<16x128xbf16>,
    return
  }
  func.func @transform_0(%arg0: i32) -> (i32, i32) {
    %c0_i32 = arith.constant 0 : i32
    %c0_i32_0 = arith.constant 0 : i32
    return %arg0, %c0_i32 : i32, i32
  }
  func.func @transform_1(%arg0: i32) -> (i32, i32) {
    %c0_i32 = arith.constant 0 : i32
    %c0_i32_0 = arith.constant 0 : i32
    %c0_i32_1 = arith.constant 0 : i32
    return %c0_i32, %c0_i32_0 : i32, i32
  }
  func.func @transform_2(%arg0: i32) -> (i32, i32) {
    %c0_i32 = arith.constant 0 : i32
    %c0_i32_0 = arith.constant 0 : i32
    %c0_i32_1 = arith.constant 0 : i32
    return %c0_i32, %c0_i32_0 : i32, i32
  }
  func.func @transform_3(%arg0: i32) -> (i32, i32) {
    %c0_i32 = arith.constant 0 : i32
    %c0_i32_0 = arith.constant 0 : i32
    %c0_i32_1 = arith.constant 0 : i32
    return %c0_i32, %c0_i32_0 : i32, i32
  }
  func.func @transform_4(%arg0: i32) -> (i32, i32) {
    %c0_i32 = arith.constant 0 : i32
    %c0_i32_0 = arith.constant 0 : i32
    %c0_i32_1 = arith.constant 0 : i32
    return %c0_i32, %c0_i32_0 : i32, i32
  }
  func.func @transform_5(%arg0: i32) -> (i32, i32) {
    %c0_i32 = arith.constant 0 : i32
    %c0_i32_0 = arith.constant 0 : i32
    %c0_i32_1 = arith.constant 0 : i32
    return %c0_i32, %c0_i32_0 : i32, i32
  }
  func.func @transform_6(%arg0: i32) -> (i32, i32) {
    %c0_i32 = arith.constant 0 : i32
    %c0_i32_0 = arith.constant 0 : i32
    %c0_i32_1 = arith.constant 0 : i32
    return %c0_i32, %c0_i32_0 : i32, i32
  }
  func.func @transform_7(%arg0: i32) -> (i32, i32) {
    %c0_i32 = arith.constant 0 : i32
    %c0_i32_0 = arith.constant 0 : i32
    return %arg0, %c0_i32 : i32, i32
  }
}

</mosaic_0001>

<bundles_post_ra>
// kernel: actor_ma_forward.1
= control target key start
LH: loop header
LB: loop body
LE: loop exit
PB: predicated region body
PF: predicated region fallthrough
CT: control target
= control target key end

     0   :  { %12 = vsyncpa [#allocation3], 0  ;;  %s1078_s0 = inlined_call_operand.vmem [shape: f32[16,16], index: 0, kind: input, shape index: {}]   ;;  %s1079_s1 = inlined_call_operand.hbm [shape: bf16[16,512], index: 1, kind: input, shape index: {}]   ;;  %s1080_s2 = inlined_call_operand.vmem [shape: f32[1,512], index: 2, kind: input, shape index: {}]   ;;  %s1081_s3 = inlined_call_operand.hbm [shape: bf16[512,128], index: 3, kind: input, shape index: {}]   ;;  %s1082_s4 = inlined_call_operand.vmem [shape: f32[1,128], index: 4, kind: input, shape index: {}]   ;;  %s1083_s5 = inlined_call_operand.hbm [shape: bf16[128,128], index: 5, kind: input, shape index: {}]   ;;  %s1084_s6 = inlined_call_operand.vmem [shape: f32[1,128], index: 6, kind: input, shape index: {}]   ;;  %s1085_s7 = inlined_call_operand.vmem [shape: bf16[16,128], index: 7, kind: output, shape index: {}]  }
   0x1   :  { %13 = vsyncpa [#allocation5], 0  ;;  %s957_s24 = smov [#allocation4]   ;;  %s887_s28 = scalar_lea.hbm %s1081_s3, 4096 }
   0x2   :  { %s35_s25 = sshll.u32 %s957_s24, 4  ;;  %p888_p0 = scmp.ne.s32.totalorder %s1081_s3, %s887_s28  ;;  %s36_s25 = int_to_ptr.vmem [resolvable:$true] %s35_s25 }
   0x3   :  { %p891_p1 = scmp.lt.u32.totalorder %s887_s28, %s1081_s3 }
   0x5   :  { %p893_p2 = pnand %p891_p1, %p888_p0 }
   0x7   :  { %896 = shalt.err (!%p893_p2)
}
   0x8   :  { %s897_s10 = scalar_lea.vmem %s36_s25, 4096  ;;  %p902_p4 = scmp.lt.s32.totalorder %s36_s25, %s36_s25 }
   0x9   :  { %p898_p3 = scmp.ne.s32.totalorder %s36_s25, %s897_s10  ;;  %p903_p5 = scmp.lt.s32.totalorder %s897_s10, %s897_s10 }
   0xb   :  { %p904_p6 = por %p903_p5, %p902_p4 }
   0xd   :  { %p905_p7 = pnand %p904_p6, %p898_p3 }
   0xf   :  { %908 = shalt.err (!%p905_p7)
}
  0x10   :  { %s958_s11 = smov 64   ;;  %s959_s12 = smov 4  }
  0x11   :  { %41 = dma.hbm_to_vmem [thread:$0]  %s1081_s3, 4096, %s36_s25, [#allocation5], %s958_s11, %s958_s11, %s959_s12  }
  0x12   :  { %s960_s15 = smov [#allocation2]   ;;  %s909_s19 = scalar_lea.hbm %s1079_s1, 512 }
  0x13   :  { %s21_s16 = sshll.u32 %s960_s15, 4  ;;  %p910_p8 = scmp.ne.s32.totalorder %s1079_s1, %s909_s19  ;;  %s22_s16 = int_to_ptr.vmem [resolvable:$true] %s21_s16 }
  0x14   :  { %p913_p9 = scmp.lt.u32.totalorder %s909_s19, %s1079_s1 }
  0x16   :  { %p915_p10 = pnand %p913_p9, %p910_p8 }
  0x18   :  { %918 = shalt.err (!%p915_p10)
}
  0x19   :  { %s919_s24 = scalar_lea.vmem %s22_s16, 512  ;;  %p924_p12 = scmp.lt.s32.totalorder %s22_s16, %s22_s16 }
  0x1a   :  { %p920_p11 = scmp.ne.s32.totalorder %s22_s16, %s919_s24  ;;  %p925_p13 = scmp.lt.s32.totalorder %s919_s24, %s919_s24 }
  0x1c   :  { %p926_p0 = por %p925_p13, %p924_p12 }
  0x1e   :  { %p927_p1 = pnand %p926_p0, %p920_p11 }
  0x20   :  { %930 = shalt.err (!%p927_p1)
}
  0x21   :  { %s961_s3 = smov 256   ;;  %s962_s25 = smov 16  }
  0x22   :  { %27 = dma.hbm_to_vmem [thread:$0]  %s1079_s1, 512, %s22_s16, [#allocation3], %s961_s3, %s961_s3, %s962_s25  }
  0x23   :  { %s963_s28 = smov [#allocation6]   ;;  %s931_s9 = scalar_lea.hbm %s1083_s5, 1024 }
  0x24   :  { %s49_s29 = sshll.u32 %s963_s28, 4  ;;  %p932_p2 = scmp.ne.s32.totalorder %s1083_s5, %s931_s9  ;;  %s50_s29 = int_to_ptr.vmem [resolvable:$true] %s49_s29 }
  0x25   :  { %p935_p3 = scmp.lt.u32.totalorder %s931_s9, %s1083_s5 }
  0x27   :  { %p937_p4 = pnand %p935_p3, %p932_p2 }
  0x29   :  { %940 = shalt.err (!%p937_p4)
}
  0x2a   :  { %s941_s17 = scalar_lea.vmem %s50_s29, 1024  ;;  %p946_p6 = scmp.lt.s32.totalorder %s50_s29, %s50_s29 }
  0x2b   :  { %p942_p5 = scmp.ne.s32.totalorder %s50_s29, %s941_s17  ;;  %p947_p7 = scmp.lt.s32.totalorder %s941_s17, %s941_s17 }
  0x2d   :  { %p948_p8 = por %p947_p7, %p946_p6 }
  0x2f   :  { %p949_p9 = pnand %p948_p8, %p942_p5 }
  0x31   :  { %952 = shalt.err (!%p949_p9)
}
  0x32   :  { %55 = dma.hbm_to_vmem [thread:$0]  %s1083_s5, 1024, %s50_s29, [#allocation5], %s958_s11, %s958_s11, %s959_s12  }
  0x33   :  { %953 = dma.done.wait [#allocation3], 512  }
  0x34   :  { %954 = vsyncadd [#allocation3], 4294966784 }
  0x35   :  { %955 = dma.done.wait [#allocation5], 5120  }
  0x36   :  { %956 = vsyncadd [#allocation5], 4294962176  ;;  %v964_v0 = vmov 0   ;;  %v837_v1 = vld [vmem:[#allocation2 + $0x4] ss:$16 sps:$4 sm:$0xff]   ;;  %v69_v4 = vld [vmem:[%s1078_s0 + $0x8] sm:$0xff]  ;;  %v77_v41 = vlaneseq }
  0x37   :  { %153 = vmatprep.mubr.bf16.mxu1 %v964_v0  ;;  %v839_v2 = vld [vmem:[#allocation2] ss:$16 sps:$4 sm:$0xff]   ;;  %121 = vmatprep.subr.bf16.mxu1 %v837_v1  ;;  %vm117_vm0 = vcmask 130048   ;;  %v840_v6 = vld [vmem:[#allocation2 + $0x8] ss:$16 sps:$4 sm:$0xff]   ;;  %v965_v40 = vmov 0.0  }
  0x38   :  { %v68_v3 = vld [vmem:[%s1078_s0] sm:$0xff]  ;;  %122 = vmatpush1.bf16.msra.mxu1 %v839_v2  ;;  %v842_v7 = vld [vmem:[#allocation2 + $0xc] ss:$16 sps:$4 sm:$0xff]   ;;  %v847_v12 = vld [vmem:[#allocation4 + $0x50] sm:$0xff]   ;;  %v78_v42 = vshrl.u32 %v77_v41, 7  ;;  %vm966_vm1 = vmmov 0  }
  0x39   :  { %v70_v5 = vpack.c.bf16 %v69_v4, %v68_v3  ;;  %v843_v8 = vld [vmem:[#allocation4 + $0x40] sm:$0xff]   ;;  %164 = vmatprep.subr.bf16.mxu1 %v842_v7  ;;  %v845_v10 = vld [vmem:[#allocation4 + $0x48] sm:$0xff]   ;;  %v849_v14 = vld [vmem:[#allocation4 + $0x10] sm:$0xff]  }
  0x3a   :  { %v844_v9 = vld [vmem:[#allocation4] sm:$0xff]   ;;  %754 = vmatprep.subr.bf16.mxu0 %v843_v8  ;;  %v846_v11 = vld [vmem:[#allocation4 + $0x8] sm:$0xff]   ;;  %v851_v16 = vld [vmem:[#allocation4 + $0x58] sm:$0xff]   ;;  %v79_v43 = vsub.s32 0, %v78_v42  ;;  %v83_v45 = vsub.s32 1, %v78_v42  ;;  %v87_v51 = vsub.s32 2, %v78_v42 }
  0x3b   :  { %701 = vmatmul.mubr.msk.bf16.vlgmr.msra.gmra.mrb[0].mxu1 %vm117_vm0, %v70_v5  ;;  %755 = vmatpush3.bf16.msra.mxu0 %v844_v9  ;;  %v848_v13 = vld [vmem:[#allocation4 + $0xc0] sm:$0xff]   ;;  %v852_v17 = vld [vmem:[#allocation4 + $0xc8] sm:$0xff]   ;;  %v853_v18 = vld [vmem:[#allocation4 + $0x18] sm:$0xff]   ;;  %v91_v54 = vsub.s32 3, %v78_v42 }
  0x3c   :  { %165 = vmatpush1.bf16.msra.mxu1 %v840_v6  ;;  %196 = vmatprep.mubr.bf16.mxu1 %v964_v0  ;;  %v850_v15 = vld [vmem:[#allocation4 + $0x80] sm:$0xff]   ;;  %v854_v19 = vld [vmem:[#allocation4 + $0x88] sm:$0xff]   ;;  %v856_v21 = vld [vmem:[#allocation4 + $0xd0] sm:$0xff]  }
  0x3d   :  { %756 = vmatprep.subr.bf16.mxu0 %v845_v10  ;;  %776 = vmatprep.subr.bf16.mxu1 %v848_v13  ;;  %v855_v20 = vld [vmem:[#allocation4 + $0x60] sm:$0xff]   ;;  %v858_v22 = vld [vmem:[#allocation4 + $0x90] sm:$0xff]   ;;  %v859_v24 = vld [vmem:[#allocation4 + $0x68] sm:$0xff]  }
  0x3e   :  { %v857_v23 = vld [vmem:[#allocation4 + $0x20] sm:$0xff]   ;;  %v860_v25 = vld [vmem:[#allocation4 + $0xd8] sm:$0xff]   ;;  %v861_v26 = vld [vmem:[#allocation4 + $0x28] sm:$0xff]  }
  0x3f   :  { %757 = vmatpush3.bf16.msra.mxu0 %v846_v11  ;;  %v862_v27 = vld [vmem:[#allocation4 + $0x98] sm:$0xff]   ;;  %v863_v28 = vld [vmem:[#allocation4 + $0x70] sm:$0xff]   ;;  %v864_v29 = vld [vmem:[#allocation4 + $0xe0] sm:$0xff]  }
  0x40   :  { %758 = vmatprep.subr.bf16.mxu0 %v847_v12  ;;  %v865_v30 = vld [vmem:[#allocation4 + $0x30] sm:$0xff]   ;;  %v866_v31 = vld [vmem:[#allocation4 + $0xa0] sm:$0xff]   ;;  %v867_v32 = vld [vmem:[#allocation4 + $0x78] sm:$0xff]  }
  0x41   :  { %v868_v33 = vld [vmem:[#allocation4 + $0xe8] sm:$0xff]   ;;  %v869_v34 = vld [vmem:[#allocation4 + $0x38] sm:$0xff]   ;;  %v871_v36 = vld [vmem:[#allocation4 + $0xf0] sm:$0xff]  }
  0x42   :  { %v870_v35 = vld [vmem:[#allocation4 + $0xa8] sm:$0xff]   ;;  %v872_v37 = vld [vmem:[#allocation4 + $0xb0] sm:$0xff]   ;;  %v873_v38 = vld [vmem:[#allocation4 + $0xf8] sm:$0xff]  }
  0x43   :  { %702 = vmatmul.mubr.msk.bf16.vlgmr.msra.gmra.mrb[4].mxu1 %vm117_vm0, %v70_v5  ;;  %759 = vmatpush3.bf16.msra.mxu0 %v849_v14  ;;  %v874_v39 = vld [vmem:[#allocation4 + $0xb8] sm:$0xff]   ;;  %v75_v44 = vld [vmem:[%s1080_s2] sm:$0xf]  ;;  %v876_v11 = vld [vmem:[#allocation6 + $0x8] sm:$0xff]  }
  0x44   :  { %777 = vmatpush3.bf16.msra.mxu1 %v850_v15  ;;  %760 = vmatprep.subr.bf16.mxu0 %v851_v16  ;;  %v80_v46 = vrot.slane %v75_v44, %v79_v43  ;;  %v84_v47 = vrot.slane %v75_v44, %v83_v45  ;;  %v88_v60 = vrot.slane %v75_v44, %v87_v51  ;;  %v875_v3 = vld [vmem:[#allocation6] sm:$0xff]  }
  0x45   :  { %778 = vmatprep.subr.bf16.mxu1 %v852_v17  ;;  %v92_v63 = vrot.slane %v75_v44, %v91_v54  ;;  %v736_v44 = vld [vmem:[%s1084_s6] ss:$0 sm:$0xff] }
  0x47   :  { %761 = vmatpush3.bf16.msra.mxu0 %v853_v18  ;;  %v877_v18 = vld [vmem:[#allocation6 + $0x10] sm:$0xff]  }
  0x48   :  { %779 = vmatpush3.bf16.msra.mxu1 %v854_v19  ;;  %762 = vmatprep.subr.bf16.mxu0 %v855_v20  ;;  %v878_v19 = vld [vmem:[#allocation6 + $0x18] sm:$0xff]   ;;  %v879_v20 = vld [vmem:[#allocation6 + $0x20] sm:$0xff]  }
  0x49   :  { %780 = vmatprep.subr.bf16.mxu1 %v856_v21  ;;  %v880_v21 = vld [vmem:[#allocation6 + $0x28] sm:$0xff]  }
  0x4b   :  { %763 = vmatpush3.bf16.msra.mxu0 %v857_v23  ;;  %v882_v23 = vld [vmem:[#allocation6 + $0x38] sm:$0xff]  }
  0x4c   :  { %781 = vmatpush3.bf16.msra.mxu1 %v858_v22  ;;  %764 = vmatprep.subr.bf16.mxu0 %v859_v24  ;;  %v881_v22 = vld [vmem:[#allocation6 + $0x30] sm:$0xff]  }
  0x4d   :  { %782 = vmatprep.subr.bf16.mxu1 %v860_v25 }
  0x4f   :  { %765 = vmatpush3.bf16.msra.mxu0 %v861_v26 }
  0x50   :  { %783 = vmatpush3.bf16.msra.mxu1 %v862_v27  ;;  %766 = vmatprep.subr.bf16.mxu0 %v863_v28 }
  0x51   :  { %784 = vmatprep.subr.bf16.mxu1 %v864_v29 }
  0x53   :  { %767 = vmatpush3.bf16.msra.mxu0 %v865_v30  ;;  %v703_v30 = vld [vmem:[%s1082_s4] ss:$0 sm:$0xff] }
  0x54   :  { %785 = vmatpush3.bf16.msra.mxu1 %v866_v31  ;;  %768 = vmatprep.subr.bf16.mxu0 %v867_v32 }
  0x55   :  { %786 = vmatprep.subr.bf16.mxu1 %v868_v33 }
  0x57   :  { %769 = vmatpush3.bf16.msra.mxu0 %v869_v34 }
  0x58   :  { %787 = vmatpush3.bf16.msra.mxu1 %v870_v35  ;;  %807 = vmatprep.subr.bf16.mxu0 %v965_v40 }
  0x59   :  { %788 = vmatprep.subr.bf16.mxu1 %v871_v36 }
  0x5c   :  { %789 = vmatpush3.bf16.msra.mxu1 %v872_v37 }
  0x5d   :  { %790 = vmatprep.subr.bf16.mxu1 %v873_v38 }
  0x60   :  { %791 = vmatpush3.bf16.msra.mxu1 %v874_v39 }
 0x10e   :  { %v155_v48 = vpop.f32.mrb[0].mxu1 }
 0x10f   :  { %v156_v49 = vadd.f32 %v155_v48, %v80_v46  ;;  %v157_v50 = vpop.f32.mrb[1].mxu1 }
 0x110   :  { %v158_v52 = vadd.f32 %v157_v50, %v84_v47  ;;  %v159_v53 = vpop.f32.mrb[2].mxu1 }
 0x111   :  { %v160_v55 = vadd.f32 %v159_v53, %v80_v46  ;;  %v161_v56 = vpop.f32.mrb[3].mxu1  ;;  %v207_v58 = vmax.f32 %v156_v49, 0.0 }
 0x112   :  { %v162_v57 = vadd.f32 %v161_v56, %v84_v47  ;;  %v208_v61 = vmax.f32 %v158_v52, 0.0 }
 0x113   :  { %v211_v59 = vmax.f32 %v160_v55, 0.0 }
 0x114   :  { %v212_v62 = vmax.f32 %v162_v57, 0.0 }
 0x115   :  { %v215_v0 = vpack.c.bf16 %v211_v59, %v207_v58 }
 0x116   :  { %v198_v1 = vpop.f32.mrb[4].mxu1  ;;  %v216_v2 = vpack.c.bf16 %v212_v62, %v208_v61 }
 0x117   :  { %v199_v4 = vadd.f32 %v198_v1, %v88_v60  ;;  %v200_v5 = vpop.f32.mrb[5].mxu1 }
 0x118   :  { %v201_v6 = vadd.f32 %v200_v5, %v92_v63  ;;  %v202_v7 = vpop.f32.mrb[6].mxu1  ;;  %514 = vmatprep.mubr.bf16.mxu0 %v216_v2 }
 0x119   :  { %v203_v8 = vadd.f32 %v202_v7, %v88_v60  ;;  %v204_v9 = vpop.f32.mrb[7].mxu1  ;;  %515 = vmatmul.mubr.bf16.vlgmr.msra.gmra.mrb[0].mxu0 %v215_v0  ;;  %v209_v12 = vmax.f32 %v199_v4, 0.0 }
 0x11a   :  { %v205_v10 = vadd.f32 %v204_v9, %v92_v63  ;;  %808 = vmatpush3.bf16.msra.mxu0 %v875_v3  ;;  %v210_v14 = vmax.f32 %v201_v6, 0.0  ;;  %823 = vmatprep.mubr.msk.bf16.mxu0 %vm966_vm1, %v965_v40 }
 0x11b   :  { %v213_v13 = vmax.f32 %v203_v8, 0.0  ;;  %809 = vmatprep.subr.bf16.mxu0 %v965_v40 }
 0x11c   :  { %v214_v15 = vmax.f32 %v205_v10, 0.0 }
 0x11d   :  { %v217_v16 = vpack.c.bf16 %v213_v13, %v209_v12 }
 0x11e   :  { %v218_v17 = vpack.c.bf16 %v214_v15, %v210_v14  ;;  %810 = vmatpush3.bf16.msra.mxu0 %v876_v11 }
 0x11f   :  { %811 = vmatprep.subr.bf16.mxu0 %v965_v40 }
 0x120   :  { %555 = vmatprep.mubr.bf16.mxu1 %v218_v17 }
 0x121   :  { %556 = vmatmul.mubr.bf16.vlgmr.msra.gmra.mrb[8].mxu1 %v217_v16 }
 0x122   :  { %812 = vmatpush3.bf16.msra.mxu0 %v877_v18 }
 0x123   :  { %813 = vmatprep.subr.bf16.mxu0 %v965_v40 }
 0x126   :  { %814 = vmatpush3.bf16.msra.mxu0 %v878_v19 }
 0x127   :  { %815 = vmatprep.subr.bf16.mxu0 %v965_v40 }
 0x12a   :  { %816 = vmatpush3.bf16.msra.mxu0 %v879_v20 }
 0x12b   :  { %817 = vmatprep.subr.bf16.mxu0 %v965_v40 }
 0x12e   :  { %818 = vmatpush3.bf16.msra.mxu0 %v880_v21 }
 0x12f   :  { %819 = vmatprep.subr.bf16.mxu0 %v965_v40 }
 0x132   :  { %820 = vmatpush3.bf16.msra.mxu0 %v881_v22 }
 0x133   :  { %821 = vmatprep.subr.bf16.mxu0 %v965_v40 }
 0x136   :  { %822 = vmatpush3.bf16.msra.mxu0 %v882_v23 }
 0x1ec   :  { %v770_v24 = vpop.f32.mrb[0].mxu0 }
 0x1ed   :  { %v771_v25 = vpop.f32.mrb[1].mxu0 }
 0x1ee   :  { %v772_v26 = vadd.f32 %v771_v25, %v770_v24  ;;  %v773_v27 = vpop.f32.mrb[2].mxu0 }
 0x1ef   :  { %v774_v28 = vpop.f32.mrb[3].mxu0 }
 0x1f0   :  { %v775_v29 = vadd.f32 %v774_v28, %v773_v27  ;;  %v517_v33 = vadd.f32 %v772_v26, %v703_v30 }
 0x1f2   :  { %v520_v37 = vadd.f32 %v775_v29, %v703_v30 }
 0x1f4   :  { %v792_v31 = vpop.f32.mrb[8].mxu1 }
 0x1f5   :  { %v793_v32 = vpop.f32.mrb[9].mxu1 }
 0x1f6   :  { %v794_v34 = vadd.f32 %v793_v32, %v792_v31  ;;  %v795_v35 = vpop.f32.mrb[10].mxu1 }
 0x1f7   :  { %v796_v36 = vpop.f32.mrb[11].mxu1 }
 0x1f8   :  { %v558_v38 = vadd.f32 %v794_v34, %v517_v33  ;;  %v797_v39 = vadd.f32 %v796_v36, %v795_v35 }
 0x1fa   :  { %v561_v40 = vadd.f32 %v797_v39, %v520_v37  ;;  %v564_v41 = vmax.f32 %v558_v38, 0.0 }
 0x1fc   :  { %v565_v42 = vmax.f32 %v561_v40, 0.0 }
 0x1fe   :  { %v566_v43 = vpack.c.bf16 %v565_v42, %v564_v41 }
 0x200   :  { %824 = vmatmul.mubr.bf16.vlgmr.msra.gmra.mrb[4].mxu0 %v566_v43 }
 0x2d3   :  { %v672_v45 = vpop.f32.mrb[4].mxu0 }
 0x2d4   :  { %v673_v46 = vadd.f32 %v736_v44, %v672_v45  ;;  %v825_v47 = vpop.f32.mrb[5].mxu0 }
 0x2d5   :  { %v675_v48 = vpop.f32.mrb[6].mxu0 }
 0x2d6   :  { %v676_v49 = vadd.f32 %v736_v44, %v675_v48  ;;  %v826_v50 = vpop.f32.mrb[7].mxu0  ;;  %883 = vtanh.f32 %v673_v46 }
 0x2d8   :  { %885 = vtanh.f32 %v676_v49 }
 0x2e0   :  { %v884_v51 = vpop.eup %883 }
 0x2e2   :  { %v886_v52 = vpop.eup %885 }
 0x2e3   :  { %v752_v53 = vpack.c.bf16 %v886_v52, %v884_v51 }
 0x2e5   :  { %753 = vst [vmem:[%s1085_s7] sm:$0xff] %v752_v53  }
 0x2e6   :  { %695 = vsyncpa [#allocation3], 1 }
 0x2e7   :  { %696 = vsyncpa [#allocation5], 1 }

</bundles_post_ra>
